<compile_context>
chip_gen: v7x
topology: tpu7x:2x2x1
jax: 0.10.0
libtpu: 0.0.40
codegen_flags: <defaults>
</compile_context>

<pallas_src>
import functools
import math

import jax
import jax.numpy as jnp
from jax import lax
from jax.experimental import pallas as pl
from jax.experimental.pallas import tpu as pltpu

_NEG_BIG = -1e30  # finite "minus infinity": keeps every intermediate finite


def _round_up(x, m):
    return ((x + m - 1) // m) * m


def _cdiv(a, b):
    return -(-a // b)


def _vmem_capacity_bytes():
    """Best-effort VMEM capacity query; conservative fallback (v7x per-TC)."""
    try:
        cap = getattr(pltpu.get_tpu_info(), "vmem_capacity_bytes", None)
        if cap:
            return int(cap)
    except Exception:
        pass
    return 64 << 20


def _supcon_tile_kernel(fr_ref, fc_ref, lr_ref, lc_ref, bias_ref, pcnt_ref,
                        o_ref, m_sc, s_sc, psum_sc, *,
                        tm, tn, temperature, base_temperature,
                        fc_resident, mask_padded_cols):
    i = pl.program_id(0)
    j = pl.program_id(1)

    @pl.when(j == 0)
    def _init():
        m_sc[...] = jnp.full_like(m_sc, -jnp.inf)
        s_sc[...] = jnp.zeros_like(s_sc)
        psum_sc[...] = jnp.zeros_like(psum_sc)

    cs = pl.multiple_of(j * tn, tn)                  # global column offset of tile
    lc = lc_ref[:, pl.ds(cs, tn)]                    # (1, tn) column labels
    if fc_resident:
        fc = fc_ref[pl.ds(cs, tn), :]                # slice resident feature matrix
    else:
        fc = fc_ref[...]                             # streamed column block

    # sim_ij = <f_i, f_j> / T  (features pre-scaled by rsqrt(T); contract dim 1
    # of both operands so no explicit transpose / XLU pass is needed).
    sim = lax.dot_general(fr_ref[...], fc, (((1,), (1,)), ((), ())),
                          preferred_element_type=jnp.float32)
    if mask_padded_cols:
        # Padded columns carry a -1e30 additive bias (single VPU add per tile).
        sim = sim + bias_ref[:, pl.ds(cs, tn)]

    # Diagonal (self-pair) mask from cheap (tm,1)/(1,tn) iotas + one compare.
    row_ids = i * tm + lax.broadcasted_iota(jnp.int32, (tm, 1), 0)
    col_ids = cs + lax.broadcasted_iota(jnp.int32, (1, tn), 1)
    not_diag = row_ids != col_ids                    # (tm, tn)
    pos = jnp.logical_and(lr_ref[...] == lc, not_diag)

    # Online log-sum-exp over columns (row max includes the diagonal, matching
    # logits_max in the reference; the max only affects numerics, not the loss).
    m_prev = m_sc[...]
    m_new = jnp.maximum(m_prev, jnp.max(sim, axis=1, keepdims=True))
    alpha = jnp.exp(m_prev - m_new)
    p = jnp.where(not_diag, jnp.exp(sim - m_new), 0.0)   # diag excluded (inv_diagonal)
    m_sc[...] = m_new

    # Row sums offloaded to the (otherwise idle) MXU via a ones-(tn,1) matvec;
    # only the row max above uses the XLU.
    ones_col = jnp.ones((tn, 1), jnp.float32)
    dn = (((1,), (0,)), ((), ()))
    s_sc[...] = alpha * s_sc[...] + lax.dot_general(
        p, ones_col, dn, preferred_element_type=jnp.float32)
    psum_sc[...] += lax.dot_general(
        jnp.where(pos, sim, 0.0), ones_col, dn,
        preferred_element_type=jnp.float32)

    @pl.when(j == pl.num_programs(1) - 1)
    def _finalize():
        # uniformity = log(sum_{k != i} exp(sim_ik)) expressed in sim space.
        uniformity = m_sc[...] + jnp.log(s_sc[...])
        # NOTE: pcnt can be 0 for labels unique in the batch with n_views == 1
        # (0/0 -> NaN), exactly like the PyTorch original.
        log_prob = psum_sc[...] / pcnt_ref[...] - uniformity
        o_ref[...] = (-(temperature / base_temperature) * log_prob).astype(o_ref.dtype)


def kernelized_supcon_loss(features, labels=None, *, temperature=0.07,
                           base_temperature=0.07, block_m=256, block_n=256,
                           matmul_dtype=jnp.bfloat16, resident_features=None):
    """SupCon loss (method='supcon', contrast_mode='all'), forward pass.

    features: [bsz, n_views, n_feats]; labels: [bsz] int or None (SimCLR).
    matmul_dtype: dtype of the MXU similarity matmul inputs (default bf16);
      softmax / accumulation always stay float32.
    resident_features: None = auto (keep features resident in VMEM if they fit),
      True/False to force.
    """
    # TODO(synk): only method='supcon', contrast_mode='all' (the module defaults)
    # are implemented; kernelized 'threshold'/'expw' and contrast_mode='one' are not.
    # TODO(synk): forward-only; jax.grad would need a custom_vjp to reproduce the
    # torch logits_max.detach() semantics.
    if features.ndim != 3:
        raise ValueError('`features` needs to be [bsz, n_views, n_feats]')
    bsz, n_views, d = features.shape
    n = bsz * n_views

    # Clamp tiles for small batches while keeping sublane/lane alignment
    # (16 on sublanes covers bf16 packing, 128 on lanes).
    block_m = min(block_m, _round_up(n, 16))
    block_n = min(block_n, _round_up(n, 128))
    if block_m % 16 or block_n % 128:
        raise ValueError('block_m must be a multiple of 16, block_n of 128')

    # torch.cat(torch.unbind(features, dim=1), dim=0): view-major stacking.
    feats = jnp.transpose(features, (1, 0, 2)).reshape(n, d).astype(jnp.float32)
    # Fold 1/temperature into both matmul operands once (rsqrt on each side).
    feats = feats * (1.0 / math.sqrt(float(temperature)))
    if matmul_dtype is not None:
        feats = feats.astype(matmul_dtype)
    itemsize = jnp.dtype(feats.dtype).itemsize

    # Flattened row r corresponds to sample r % bsz. labels=None degenerates to
    # SimCLR (mask = eye(bsz)), i.e. labels = arange(bsz).
    if labels is None:
        base_labels = jnp.arange(bsz, dtype=jnp.int32)
    else:
        base_labels = jnp.asarray(labels).reshape(-1).astype(jnp.int32)
        if base_labels.shape[0] != bsz:
            raise ValueError('Num of labels does not match num of features')
    labels_flat = jnp.tile(base_labels, n_views)

    # Positive counts per anchor (excluding self) precomputed once in the
    # wrapper: removes one cross-lane reduce + a bool->f32 cast per tile.
    same = (base_labels[:, None] == base_labels[None, :]).astype(jnp.float32)
    pcnt_flat = jnp.tile(n_views * jnp.sum(same, axis=1) - 1.0, n_views)

    # Grid iterates only real row/column blocks; the array is padded just far
    # enough to cover the last block of each axis.
    g_rows = _cdiv(n, block_m)
    g_cols = _cdiv(n, block_n)
    n_pad = max(g_rows * block_m, g_cols * block_n)
    d_pad = d if d % 128 == 0 else _round_up(d, 128)  # lane-align the feature dim
    mask_padded_cols = (g_cols * block_n) > n

    if n_pad != n or d_pad != d:
        feats_p = jnp.zeros((n_pad, d_pad), feats.dtype).at[:n, :d].set(feats)
    else:
        feats_p = feats
    lab_p = jnp.full((n_pad,), jnp.iinfo(jnp.int32).min,
                     dtype=jnp.int32).at[:n].set(labels_flat)
    pcnt_p = jnp.ones((n_pad,), jnp.float32).at[:n].set(pcnt_flat)
    col_bias = jnp.where(jnp.arange(n_pad) < n, 0.0,
                         _NEG_BIG)[None, :].astype(jnp.float32)
    lab_row = lab_p[:, None]      # (n_pad, 1): row labels along sublanes
    lab_col = lab_p[None, :]      # (1, n_pad): col labels, kept resident
    pcnt_col = pcnt_p[:, None]    # (n_pad, 1)

    # ---- VMEM budget: keep the whole feature matrix resident when it fits
    #      (counts 2x for default double-buffering of every BlockSpec). ----
    vmem_cap = _vmem_capacity_bytes()
    tile_tmp = 8 * block_m * block_n * 4                  # sim/p/mask temporaries
    common = (2 * block_m * d_pad * itemsize              # row-feature block
              + 3 * 2 * n_pad * 4                         # labels / bias / pcnt
              + tile_tmp + (2 << 20))
    resident_need = common + 2 * n_pad * d_pad * itemsize
    streamed_need = common + 2 * block_n * d_pad * itemsize
    budget = vmem_cap - (16 << 20)
    if resident_features is None:
        fc_resident = resident_need <= budget
    else:
        fc_resident = bool(resident_features)
    need = resident_need if fc_resident else streamed_need
    vmem_limit = int(min(vmem_cap - (4 << 20), max(need + (16 << 20), 32 << 20)))

    if fc_resident:
        fc_spec = pl.BlockSpec((n_pad, d_pad), lambda i, j: (0, 0))
    else:
        fc_spec = pl.BlockSpec((block_n, d_pad), lambda i, j: (j, 0))

    kernel = functools.partial(
        _supcon_tile_kernel,
        tm=block_m, tn=block_n,
        temperature=float(temperature),
        base_temperature=float(base_temperature),
        fc_resident=fc_resident,
        mask_padded_cols=mask_padded_cols)

    per_row = pl.pallas_call(
        kernel,
        out_shape=jax.ShapeDtypeStruct((n_pad, 1), jnp.float32),
        grid_spec=pltpu.PrefetchScalarGridSpec(
            num_scalar_prefetch=0,
            grid=(g_rows, g_cols),
            in_specs=[
                pl.BlockSpec((block_m, d_pad), lambda i, j: (i, 0)),  # row feats
                fc_spec,                                              # col feats
                pl.BlockSpec((block_m, 1), lambda i, j: (i, 0)),      # row labels
                pl.BlockSpec((1, n_pad), lambda i, j: (0, 0)),        # col labels
                pl.BlockSpec((1, n_pad), lambda i, j: (0, 0)),        # col pad bias
                pl.BlockSpec((block_m, 1), lambda i, j: (i, 0)),      # positive counts
            ],
            out_specs=pl.BlockSpec((block_m, 1), lambda i, j: (i, 0)),
            scratch_shapes=[pltpu.VMEM((block_m, 1), jnp.float32)
                            for _ in range(3)],
        ),
        compiler_params=pltpu.CompilerParams(
            dimension_semantics=("parallel", "arbitrary"),
            vmem_limit_bytes=vmem_limit),
    )(feats_p, feats_p, lab_row, lab_col, col_bias, pcnt_col)

    # Tiny final mean over the valid rows stays in the wrapper (free).
    return jnp.mean(per_row[:n, 0])


def _reference_supcon(features, labels, temperature=0.07, base_temperature=0.07):
    """Pure-JAX mirror of the PyTorch forward (method='supcon', mode='all')."""
    bsz, n_views, d = features.shape
    n = bsz * n_views
    if labels is None:
        mask = jnp.eye(bsz, dtype=jnp.float32)
    else:
        labels = labels.reshape(-1, 1)
        mask = (labels == labels.T).astype(jnp.float32)
    mask = jnp.tile(mask, (n_views, n_views))
    f = jnp.transpose(features, (1, 0, 2)).reshape(n, d).astype(jnp.float32)
    inv_diag = jnp.ones((n, n), jnp.float32) - jnp.eye(n, dtype=jnp.float32)
    sim = f @ f.T / temperature
    logits = sim - jnp.max(sim, axis=1, keepdims=True)
    uniformity = jnp.log(jnp.sum(jnp.exp(logits) * inv_diag, axis=1, keepdims=True))
    positive_mask = mask * inv_diag
    log_prob = jnp.sum(positive_mask * (logits - uniformity), axis=1) / jnp.sum(
        positive_mask, axis=1)
    return jnp.mean(-(temperature / base_temperature) * log_prob)


if __name__ == "__main__":
    key = jax.random.PRNGKey(0)
    k1, k2, k3, k4 = jax.random.split(key, 4)

    # Small single-tile case (n=16, d=32; padded to 128/128 internally).
    bsz, n_views, d = 8, 2, 32
    feats = jax.random.normal(k1, (bsz, n_views, d), dtype=jnp.float32)
    feats = feats / jnp.linalg.norm(feats, axis=-1, keepdims=True)
    labels = jax.random.randint(k2, (bsz,), 0, 3)

    loss = jax.block_until_ready(
        kernelized_supcon_loss(feats, labels, matmul_dtype=jnp.float32))
    ref = _reference_supcon(feats, labels)
    assert jnp.allclose(loss, ref, rtol=1e-4, atol=1e-4), (loss, ref)

    # SimCLR path (labels=None).
    loss_u = jax.block_until_ready(
        kernelized_supcon_loss(feats, None, matmul_dtype=jnp.float32))
    ref_u = _reference_supcon(feats, None)
    assert jnp.allclose(loss_u, ref_u, rtol=1e-4, atol=1e-4), (loss_u, ref_u)

    # Multi-tile 2x2 grid (n=192, padded cols 192..255), resident-feature path.
    bsz2, nv2, d2 = 96, 2, 160
    f2 = jax.random.normal(k3, (bsz2, nv2, d2), dtype=jnp.float32)
    f2 = f2 / jnp.linalg.norm(f2, axis=-1, keepdims=True)
    l2 = jax.random.randint(k4, (bsz2,), 0, 10)
    ref2 = _reference_supcon(f2, l2)
    loss2 = jax.block_until_ready(
        kernelized_supcon_loss(f2, l2, block_m=128, block_n=128,
                               matmul_dtype=jnp.float32))
    assert jnp.allclose(loss2, ref2, rtol=1e-4, atol=1e-4), (loss2, ref2)

    # Streamed-column path (no VMEM residency) must also compile and agree.
    loss2s = jax.block_until_ready(
        kernelized_supcon_loss(f2, l2, block_m=128, block_n=128,
                               matmul_dtype=jnp.float32,
                               resident_features=False))
    assert jnp.allclose(loss2s, ref2, rtol=1e-4, atol=1e-4), (loss2s, ref2)

    # Default fast path: bf16 MXU inputs, auto tile/residency selection.
    loss_bf16 = jax.block_until_ready(kernelized_supcon_loss(f2, l2))
    assert bool(jnp.isfinite(loss_bf16))
    assert jnp.allclose(loss_bf16, ref2, rtol=5e-2, atol=5e-2), (loss_bf16, ref2)

    print("KERNEL_OK")
</pallas_src>

<mosaic_0001>
module attributes {stable_mosaic.version = 11 : i64} {
  func.func @_supcon_tile_kernel(%arg0: i32, %arg1: i32, %arg2: memref<16x128xf32, #tpu.memory_space<vmem>>, %arg3: memref<128x128xf32, #tpu.memory_space<vmem>>, %arg4: memref<16x1xi32, #tpu.memory_space<vmem>>, %arg5: memref<1x128xi32, #tpu.memory_space<vmem>>, %arg6: memref<1x128xf32, #tpu.memory_space<vmem>>, %arg7: memref<16x1xf32, #tpu.memory_space<vmem>>, %arg8: memref<16x1xf32, #tpu.memory_space<vmem>>, %arg9: memref<16x1xf32, #tpu.memory_space<vmem>>, %arg10: memref<16x1xf32, #tpu.memory_space<vmem>>, %arg11: memref<16x1xf32, #tpu.memory_space<vmem>>) attributes {dimension_semantics = [#tpu.dimension_semantics<parallel>, #tpu.dimension_semantics<arbitrary>], iteration_bounds = array<i64: 1, 1>, scalar_prefetch = 0 : i64, scratch_operands = 3 : i64, tpu.core_type = #tpu.core_type<tc>, window_params = [{transform_indices = @transform_0, window_bounds = array<i64: 16, 128>}, {pipeline_mode = #tpu.pipeline_mode<synchronous>, transform_indices = @transform_1, window_bounds = array<i64: 128, 128>}, {transform_indices = @transform_2, window_bounds = array<i64: 16, 1>}, {pipeline_mode = #tpu.pipeline_mode<synchronous>, transform_indices = @transform_3, window_bounds = array<i64: 1, 128>}, {pipeline_mode = #tpu.pipeline_mode<synchronous>, transform_indices = @transform_4, window_bounds = array<i64: 1, 128>}, {transform_indices = @transform_5, window_bounds = array<i64: 16, 1>}, {transform_indices = @transform_6, window_bounds = array<i64: 16, 1>}]} {
    %c0_i32 = arith.constant 0 : i32
    %0 = arith.cmpi eq, %arg1, %c0_i32 : i32
    %1 = arith.extui %0 : i1 to i32
    %c0_i32_0 = arith.constant 0 : i32
    %2 = arith.cmpi ne, %1, %c0_i32_0 : i32
    scf.if %2 {
      %cst_27 = arith.constant 0xFF800000 : f32
      %57 = vector.broadcast %cst_27 : f32 to vector<16x1xf32>
      %c0_28 = arith.constant 0 : index
      %c0_29 = arith.constant 0 : index
      %58 = vector.load %arg9[%c0_28, %c0_29] : memref<16x1xf32, #tpu.memory_space<vmem>>, vector<16x1xf32>
      tpu.vector_store %arg9[%c0_28, %c0_29], %57 {strides = array<i32>} : memref<16x1xf32, #tpu.memory_space<vmem>>, vector<16x1xf32>,
      %cst_30 = arith.constant 0.000000e+00 : f32
      %59 = vector.broadcast %cst_30 : f32 to vector<16x1xf32>
      %c0_31 = arith.constant 0 : index
      %c0_32 = arith.constant 0 : index
      %60 = vector.load %arg10[%c0_31, %c0_32] : memref<16x1xf32, #tpu.memory_space<vmem>>, vector<16x1xf32>
      tpu.vector_store %arg10[%c0_31, %c0_32], %59 {strides = array<i32>} : memref<16x1xf32, #tpu.memory_space<vmem>>, vector<16x1xf32>,
      %cst_33 = arith.constant 0.000000e+00 : f32
      %61 = vector.broadcast %cst_33 : f32 to vector<16x1xf32>
      %c0_34 = arith.constant 0 : index
      %c0_35 = arith.constant 0 : index
      %62 = vector.load %arg11[%c0_34, %c0_35] : memref<16x1xf32, #tpu.memory_space<vmem>>, vector<16x1xf32>
      tpu.vector_store %arg11[%c0_34, %c0_35], %61 {strides = array<i32>} : memref<16x1xf32, #tpu.memory_space<vmem>>, vector<16x1xf32>,
    } else {
    }
    %c128_i32 = arith.constant 128 : i32
    %3 = arith.muli %arg1, %c128_i32 : i32
    %4 = tpu.assume_multiple %3, 128 : i32
    %c0 = arith.constant 0 : index
    %5 = arith.index_cast %4 : i32 to index
    %6 = vector.load %arg5[%c0, %5] : memref<1x128xi32, #tpu.memory_space<vmem>>, vector<1x128xi32>
    %7 = arith.index_cast %4 : i32 to index
    %c0_1 = arith.constant 0 : index
    %8 = vector.load %arg3[%7, %c0_1] : memref<128x128xf32, #tpu.memory_space<vmem>>, vector<128x128xf32>
    %c0_2 = arith.constant 0 : index
    %c0_3 = arith.constant 0 : index
    %9 = vector.load %arg2[%c0_2, %c0_3] : memref<16x128xf32, #tpu.memory_space<vmem>>, vector<16x128xf32>
    %cst = arith.constant dense<0.000000e+00> : vector<16x128xf32>
    %10 = tpu.matmul %9, %8, %cst {dimension_numbers = #tpu.dot_dimension_numbers<[1], [1], [0], [0], [0, 0, 1, 0], [], []>} : vector<16x128xf32>, vector<128x128xf32>, vector<16x128xf32> -> vector<16x128xf32>
    %c0_4 = arith.constant 0 : index
    %11 = arith.index_cast %4 : i32 to index
    %12 = vector.load %arg6[%c0_4, %11] : memref<1x128xf32, #tpu.memory_space<vmem>>, vector<1x128xf32>
    %13 = vector.broadcast %12 : vector<1x128xf32> to vector<16x128xf32>
    %14 = arith.addf %10, %13 : vector<16x128xf32>
    %c16_i32 = arith.constant 16 : i32
    %15 = arith.muli %arg0, %c16_i32 : i32
    %16 = tpu.iota {dimensions = array<i32: 0>} : vector<16x1xi32>
    %17 = vector.broadcast %15 : i32 to vector<16x1xi32>
    %18 = arith.addi %17, %16 : vector<16x1xi32>
    %19 = tpu.iota {dimensions = array<i32: 1>} : vector<1x128xi32>
    %20 = vector.broadcast %4 : i32 to vector<1x128xi32>
    %21 = arith.addi %20, %19 : vector<1x128xi32>
    %22 = vector.broadcast %18 : vector<16x1xi32> to vector<16x128xi32>
    %23 = vector.broadcast %21 : vector<1x128xi32> to vector<16x128xi32>
    %24 = arith.cmpi ne, %22, %23 : vector<16x128xi32>
    %c0_5 = arith.constant 0 : index
    %c0_6 = arith.constant 0 : index
    %25 = vector.load %arg4[%c0_5, %c0_6] : memref<16x1xi32, #tpu.memory_space<vmem>>, vector<16x1xi32>
    %26 = vector.broadcast %25 : vector<16x1xi32> to vector<16x128xi32>
    %27 = vector.broadcast %6 : vector<1x128xi32> to vector<16x128xi32>
    %28 = arith.cmpi eq, %26, %27 : vector<16x128xi32>
    %29 = arith.andi %28, %24 : vector<16x128xi1>
    %c0_7 = arith.constant 0 : index
    %c0_8 = arith.constant 0 : index
    %30 = vector.load %arg9[%c0_7, %c0_8] : memref<16x1xf32, #tpu.memory_space<vmem>>, vector<16x1xf32>
    %cst_9 = arith.constant dense<0xFF800000> : vector<16xf32>
    %31 = vector.multi_reduction <maximumf>, %14, %cst_9 [1] : vector<16x128xf32> to vector<16xf32>
    %32 = vector.shape_cast %31 : vector<16xf32> to vector<16x1xf32>
    %33 = arith.maximumf %30, %32 : vector<16x1xf32>
    %34 = arith.subf %30, %33 : vector<16x1xf32>
    %35 = math.exp %34 : vector<16x1xf32>
    %36 = vector.broadcast %33 : vector<16x1xf32> to vector<16x128xf32>
    %37 = arith.subf %14, %36 : vector<16x128xf32>
    %38 = math.exp %37 : vector<16x128xf32>
    %cst_10 = arith.constant 0.000000e+00 : f32
    %39 = vector.broadcast %cst_10 : f32 to vector<16x128xf32>
    %40 = arith.select %24, %38, %39 : vector<16x128xi1>, vector<16x128xf32>
    %c0_11 = arith.constant 0 : index
    %c0_12 = arith.constant 0 : index
    %41 = vector.load %arg9[%c0_11, %c0_12] : memref<16x1xf32, #tpu.memory_space<vmem>>, vector<16x1xf32>
    tpu.vector_store %arg9[%c0_11, %c0_12], %33 {strides = array<i32>} : memref<16x1xf32, #tpu.memory_space<vmem>>, vector<16x1xf32>,
    %cst_13 = arith.constant 1.000000e+00 : f32
    %42 = vector.broadcast %cst_13 : f32 to vector<128x1xf32>
    %c0_14 = arith.constant 0 : index
    %c0_15 = arith.constant 0 : index
    %43 = vector.load %arg10[%c0_14, %c0_15] : memref<16x1xf32, #tpu.memory_space<vmem>>, vector<16x1xf32>
    %44 = arith.mulf %35, %43 : vector<16x1xf32>
    %cst_16 = arith.constant dense<0.000000e+00> : vector<16x1xf32>
    %45 = tpu.matmul %40, %42, %cst_16 {dimension_numbers = #tpu.dot_dimension_numbers<[1], [0], [0], [1], [0, 0, 1, 1], [], []>} : vector<16x128xf32>, vector<128x1xf32>, vector<16x1xf32> -> vector<16x1xf32>
    %46 = arith.addf %44, %45 : vector<16x1xf32>
    %c0_17 = arith.constant 0 : index
    %c0_18 = arith.constant 0 : index
    %47 = vector.load %arg10[%c0_17, %c0_18] : memref<16x1xf32, #tpu.memory_space<vmem>>, vector<16x1xf32>
    tpu.vector_store %arg10[%c0_17, %c0_18], %46 {strides = array<i32>} : memref<16x1xf32, #tpu.memory_space<vmem>>, vector<16x1xf32>,
    %c0_19 = arith.constant 0 : index
    %c0_20 = arith.constant 0 : index
    %48 = vector.load %arg11[%c0_19, %c0_20] : memref<16x1xf32, #tpu.memory_space<vmem>>, vector<16x1xf32>
    %cst_21 = arith.constant 0.000000e+00 : f32
    %49 = vector.broadcast %cst_21 : f32 to vector<16x128xf32>
    %50 = arith.select %29, %14, %49 : vector<16x128xi1>, vector<16x128xf32>
    %cst_22 = arith.constant dense<0.000000e+00> : vector<16x1xf32>
    %51 = tpu.matmul %50, %42, %cst_22 {dimension_numbers = #tpu.dot_dimension_numbers<[1], [0], [0], [1], [0, 0, 1, 1], [], []>} : vector<16x128xf32>, vector<128x1xf32>, vector<16x1xf32> -> vector<16x1xf32>
    %52 = arith.addf %48, %51 : vector<16x1xf32>
    %c0_23 = arith.constant 0 : index
    %c0_24 = arith.constant 0 : index
    %53 = vector.load %arg11[%c0_23, %c0_24] : memref<16x1xf32, #tpu.memory_space<vmem>>, vector<16x1xf32>
    tpu.vector_store %arg11[%c0_23, %c0_24], %52 {strides = array<i32>} : memref<16x1xf32, #tpu.memory_space<vmem>>, vector<16x1xf32>,
    %c0_i32_25 = arith.constant 0 : i32
    %54 = arith.cmpi eq, %arg1, %c0_i32_25 : i32
    %55 = arith.extui %54 : i1 to i32
    %c0_i32_26 = arith.constant 0 : i32
    %56 = arith.cmpi ne, %55, %c0_i32_26 : i32
    scf.if %56 {
      %c0_27 = arith.constant 0 : index
      %c0_28 = arith.constant 0 : index
      %57 = vector.load %arg9[%c0_27, %c0_28] : memref<16x1xf32, #tpu.memory_space<vmem>>, vector<16x1xf32>
      %c0_29 = arith.constant 0 : index
      %c0_30 = arith.constant 0 : index
      %58 = vector.load %arg10[%c0_29, %c0_30] : memref<16x1xf32, #tpu.memory_space<vmem>>, vector<16x1xf32>
      %59 = math.log %58 : vector<16x1xf32>
      %60 = arith.addf %57, %59 : vector<16x1xf32>
      %c0_31 = arith.constant 0 : index
      %c0_32 = arith.constant 0 : index
      %61 = vector.load %arg11[%c0_31, %c0_32] : memref<16x1xf32, #tpu.memory_space<vmem>>, vector<16x1xf32>
      %c0_33 = arith.constant 0 : index
      %c0_34 = arith.constant 0 : index
      %62 = vector.load %arg7[%c0_33, %c0_34] : memref<16x1xf32, #tpu.memory_space<vmem>>, vector<16x1xf32>
      %63 = arith.divf %61, %62 : vector<16x1xf32>
      %64 = arith.subf %63, %60 : vector<16x1xf32>
      %cst_35 = arith.constant -1.000000e+00 : f32
      %65 = vector.broadcast %cst_35 : f32 to vector<16x1xf32>
      %66 = arith.mulf %65, %64 : vector<16x1xf32>
      %c0_36 = arith.constant 0 : index
      %c0_37 = arith.constant 0 : index
      %67 = vector.load %arg8[%c0_36, %c0_37] : memref<16x1xf32, #tpu.memory_space<vmem>>, vector<16x1xf32>
      tpu.vector_store %arg8[%c0_36, %c0_37], %66 {strides = array<i32>} : memref<16x1xf32, #tpu.memory_space<vmem>>, vector<16x1xf32>,
    } else {
    }
    return
  }
  func.func @transform_0(%arg0: i32, %arg1: i32) -> (i32, i32) {
    %c0_i32 = arith.constant 0 : i32
    %c0_i32_0 = arith.constant 0 : i32
    return %arg0, %c0_i32 : i32, i32
  }
  func.func @transform_1(%arg0: i32, %arg1: i32) -> (i32, i32) {
    %c0_i32 = arith.constant 0 : i32
    %c0_i32_0 = arith.constant 0 : i32
    %c0_i32_1 = arith.constant 0 : i32
    return %c0_i32, %c0_i32_0 : i32, i32
  }
  func.func @transform_2(%arg0: i32, %arg1: i32) -> (i32, i32) {
    %c0_i32 = arith.constant 0 : i32
    %c0_i32_0 = arith.constant 0 : i32
    return %arg0, %c0_i32 : i32, i32
  }
  func.func @transform_3(%arg0: i32, %arg1: i32) -> (i32, i32) {
    %c0_i32 = arith.constant 0 : i32
    %c0_i32_0 = arith.constant 0 : i32
    %c0_i32_1 = arith.constant 0 : i32
    return %c0_i32, %c0_i32_0 : i32, i32
  }
  func.func @transform_4(%arg0: i32, %arg1: i32) -> (i32, i32) {
    %c0_i32 = arith.constant 0 : i32
    %c0_i32_0 = arith.constant 0 : i32
    %c0_i32_1 = arith.constant 0 : i32
    return %c0_i32, %c0_i32_0 : i32, i32
  }
  func.func @transform_5(%arg0: i32, %arg1: i32) -> (i32, i32) {
    %c0_i32 = arith.constant 0 : i32
    %c0_i32_0 = arith.constant 0 : i32
    return %arg0, %c0_i32 : i32, i32
  }
  func.func @transform_6(%arg0: i32, %arg1: i32) -> (i32, i32) {
    %c0_i32 = arith.constant 0 : i32
    %c0_i32_0 = arith.constant 0 : i32
    return %arg0, %c0_i32 : i32, i32
  }
}

</mosaic_0001>

<bundles_post_ra>
// kernel: tpu_custom_call.1
= control target key start
LH: loop header
LB: loop body
LE: loop exit
PB: predicated region body
PF: predicated region fallthrough
CT: control target
= control target key end

     0   :  { %vm27_vm0 = vcmask 7168   ;;  %v655_v26 = vmov -inf   ;;  %v656_v32 = vmov 0   ;;  %v657_v33 = vmov 0.0   ;;  %s830_s1 = inlined_call_operand.vmem [shape: f32[128,128], index: 1, kind: input, shape index: {}]   ;;  %s831_s0 = inlined_call_operand.vmem [shape: f32[128,128], index: 0, kind: input, shape index: {}]   ;;  %s832_s4 = inlined_call_operand.vmem [shape: f32[1,128], index: 4, kind: input, shape index: {}]   ;;  %s833_s2 = inlined_call_operand.vmem [shape: s32[128,1], index: 2, kind: input, shape index: {}]   ;;  %s834_s3 = inlined_call_operand.vmem [shape: s32[1,128], index: 3, kind: input, shape index: {}]   ;;  %s835_s5 = inlined_call_operand.vmem [shape: f32[128,1], index: 5, kind: input, shape index: {}]   ;;  %s836_s6 = inlined_call_operand.vmem [shape: f32[128,1], index: 6, kind: output, shape index: {}]  }
   0x1   :  { %v40_v0 = vld [vmem:[%s830_s1] sm:$0xff]  ;;  %v41_v1 = vld [vmem:[%s830_s1 + $0x8] sm:$0xff]  ;;  %v42_v2 = vld [vmem:[%s830_s1 + $0x10] sm:$0xff]  ;;  %28 = vst.msk [vmem:[#allocation2] sm:$0xff] %vm27_vm0, %v655_v26  ;;  %637 = vset.pattern.permute.xlu1 %v656_v32  ;;  %638 = vset.pattern.permute.xlu0 %v656_v32  ;;  %v658_v35 = vmov 1.0|1.0   ;;  %v142_v51 = vlaneseq }
   0x2   :  { %v569_v3 = vpack.c.bf16 %v41_v1, %v40_v0  ;;  %v43_v4 = vld [vmem:[%s830_s1 + $0x18] sm:$0xff]  ;;  %v56_v6 = vld [vmem:[%s831_s0] sm:$0xff]  ;;  %v45_v8 = vld [vmem:[%s830_s1 + $0x28] sm:$0xff]  ;;  %29 = vst.msk [vmem:[#allocation2 + $0x8] sm:$0xff] %vm27_vm0, %v655_v26  ;;  %601 = vmatprep.subr.bf16.mxu1 %v658_v35 }
   0x3   :  { %v573_v5 = vpack.c.bf16 %v43_v4, %v42_v2  ;;  %v44_v7 = vld [vmem:[%s830_s1 + $0x20] sm:$0xff]  ;;  %496 = vmatprep.mubr.f32.mxu0 %v56_v6  ;;  %v46_v10 = vld [vmem:[%s830_s1 + $0x30] sm:$0xff]  ;;  %v47_v11 = vld [vmem:[%s830_s1 + $0x38] sm:$0xff]  ;;  %31 = vst.msk [vmem:[#allocation3 + $0x8] sm:$0xff] %vm27_vm0, %v657_v33  ;;  %602 = vmatpush3.bf16.msra.mxu1 %v658_v35  ;;  %v143_v52 = vshrl.u32 %v142_v51, 7  ;;  %v149_v53 = vand.u32 127, %v142_v51 }
   0x4   :  { %570 = vmatprep.subr.bf16.mxu0 %v569_v3  ;;  %v577_v9 = vpack.c.bf16 %v45_v8, %v44_v7  ;;  %v581_v12 = vpack.c.bf16 %v47_v11, %v46_v10  ;;  %v48_v13 = vld [vmem:[%s830_s1 + $0x40] sm:$0xff]  ;;  %v49_v14 = vld [vmem:[%s830_s1 + $0x48] sm:$0xff]  ;;  %v50_v16 = vld [vmem:[%s830_s1 + $0x50] sm:$0xff]  ;;  %30 = vst.msk [vmem:[#allocation3] sm:$0xff] %vm27_vm0, %v657_v33  ;;  %603 = vmatprep.subr.bf16.mxu1 %v658_v35 }
   0x5   :  { %572 = vmatpush3.bf16.xpose.msra.mxu0 %v569_v3  ;;  %v585_v15 = vpack.c.bf16 %v49_v14, %v48_v13  ;;  %v51_v17 = vld [vmem:[%s830_s1 + $0x58] sm:$0xff]  ;;  %v52_v19 = vld [vmem:[%s830_s1 + $0x60] sm:$0xff]  ;;  %v53_v20 = vld [vmem:[%s830_s1 + $0x68] sm:$0xff]  ;;  %32 = vst.msk [vmem:[#allocation4] sm:$0xff] %vm27_vm0, %v657_v33  ;;  %vm152_vm1 = vcmp.ne.s32.totalorder %v143_v52, %v149_v53  ;;  %v144_v57 = vadd.s32 8, %v143_v52 }
   0x6   :  { %574 = vmatprep.subr.bf16.mxu0 %v573_v5  ;;  %v589_v18 = vpack.c.bf16 %v51_v17, %v50_v16  ;;  %v593_v21 = vpack.c.bf16 %v53_v20, %v52_v19  ;;  %v54_v22 = vld [vmem:[%s830_s1 + $0x70] sm:$0xff]  ;;  %v55_v23 = vld [vmem:[%s830_s1 + $0x78] sm:$0xff]  ;;  %v57_v25 = vld [vmem:[%s831_s0 + $0x8] sm:$0xff]  ;;  %33 = vst.msk [vmem:[#allocation4 + $0x8] sm:$0xff] %vm27_vm0, %v657_v33 }
   0x7   :  { %v597_v24 = vpack.c.bf16 %v55_v23, %v54_v22  ;;  %v404_v27 = vld [vmem:[%s832_s4] ss:$0 sm:$0xff]  ;;  %604 = vmatpush3.bf16.msra.mxu1 %v658_v35  ;;  %v155_v44 = vld [vmem:[%s833_s2 + $0x8] sm:$0xff]  ;;  %vm153_vm4 = vcmp.ne.s32.totalorder %v144_v57, %v149_v53 }
   0x8   :  { %v154_v34 = vld [vmem:[%s833_s2] sm:$0xff]  ;;  %605 = vmatprep.subr.bf16.mxu1 %v658_v35  ;;  %v387_v10 = vld [vmem:[%s835_s5 + $0x8] sm:$0xff] }
   0x9   :  { %v170_v36 = vld [vmem:[#allocation2] sm:$0xff]  ;;  %v171_v39 = vld [vmem:[#allocation2 + $0x8] sm:$0xff] }
   0xa   :  { %v405_v55 = vld [vmem:[%s834_s3] ss:$0 sm:$0xff]  ;;  %v206_v63 = vld [vmem:[#allocation3 + $0x8] sm:$0xff] }
   0xb   :  { %606 = vmatpush3.bf16.msra.mxu1 %v658_v35  ;;  %v205_v1 = vld [vmem:[#allocation3] sm:$0xff]  ;;  %v386_v11 = vld [vmem:[%s835_s5] sm:$0xff] }
   0xc   :  { %607 = vmatprep.subr.bf16.mxu1 %v658_v35  ;;  %v288_v13 = vld [vmem:[#allocation4] sm:$0xff] }
   0xd   :  { %576 = vmatpush3.bf16.xpose.msra.mxu0 %v573_v5 }
   0xe   :  { %578 = vmatprep.subr.bf16.mxu0 %v577_v9 }
   0xf   :  { %608 = vmatpush3.bf16.msra.mxu1 %v658_v35 }
  0x10   :  { %609 = vmatprep.subr.bf16.mxu1 %v658_v35 }
  0x13   :  { %610 = vmatpush3.bf16.msra.mxu1 %v658_v35 }
  0x14   :  { %611 = vmatprep.subr.bf16.mxu1 %v658_v35 }
  0x15   :  { %580 = vmatpush3.bf16.xpose.msra.mxu0 %v577_v9 }
  0x16   :  { %582 = vmatprep.subr.bf16.mxu0 %v581_v12 }
  0x17   :  { %612 = vmatpush3.bf16.msra.mxu1 %v658_v35 }
  0x18   :  { %613 = vmatprep.subr.bf16.mxu1 %v658_v35 }
  0x1b   :  { %614 = vmatpush3.bf16.msra.mxu1 %v658_v35 }
  0x1c   :  { %615 = vmatprep.subr.bf16.mxu1 %v658_v35 }
  0x1d   :  { %584 = vmatpush3.bf16.xpose.msra.mxu0 %v581_v12  ;;  %v289_v12 = vld [vmem:[#allocation4 + $0x8] sm:$0xff] }
  0x1e   :  { %586 = vmatprep.subr.bf16.mxu0 %v585_v15 }
  0x1f   :  { %616 = vmatpush3.bf16.msra.mxu1 %v658_v35 }
  0x20   :  { %617 = vmatprep.subr.bf16.mxu1 %v658_v35 }
  0x25   :  { %588 = vmatpush3.bf16.xpose.msra.mxu0 %v585_v15 }
  0x26   :  { %590 = vmatprep.subr.bf16.mxu0 %v589_v18 }
  0x2d   :  { %592 = vmatpush3.bf16.xpose.msra.mxu0 %v589_v18 }
  0x2e   :  { %594 = vmatprep.subr.bf16.mxu0 %v593_v21 }
  0x35   :  { %596 = vmatpush3.bf16.xpose.msra.mxu0 %v593_v21 }
  0x36   :  { %598 = vmatprep.subr.bf16.mxu0 %v597_v24 }
  0x3d   :  { %600 = vmatpush3.bf16.xpose.msra.mxu0 %v597_v24 }
  0x44   :  { %497 = vmatmul.mubr.f32.vlgmr.msra.gmra.mrb[0].mxu0 %v57_v25 }
 0x117   :  { %v498_v28 = vpop.f32.mrb[0].mxu0 }
 0x118   :  { %v132_v29 = vpop.f32.mrb[1].mxu0  ;;  %v756_v31 = vadd.f32 %v498_v28, %v404_v27 }
 0x119   :  { %v753_v30 = vadd.f32 %v404_v27, %v132_v29 }
 0x11b   :  { %172 = vmax.xlane.f32.xlu0 %v753_v30 }
 0x11f   :  { %174 = vmax.xlane.f32.xlu0 %v756_v31 }
 0x135   :  { %157 = vperm.xlu0 %638, %v154_v34  }
 0x1a8   :  { %v173_v37 = vpop.xlane.xlu0 %172 }
 0x1a9   :  { %v176_v38 = vmax.f32 %v170_v36, %v173_v37 }
 0x1ab   :  { %v178_v40 = vsub.f32 %v170_v36, %v176_v38  ;;  %203 = vst.msk [vmem:[#allocation2] sm:$0xff] %vm27_vm0, %v176_v38  ;;  %186 = vperm.xlu1 %637, %v176_v38  }
 0x1ac   :  { %v175_v41 = vpop.xlane.xlu0 %174 }
 0x1ad   :  { %v177_v42 = vmax.f32 %v171_v39, %v175_v41  ;;  %v180_v61 = vmul.f32 1.442695, %v178_v40 }
 0x1af   :  { %v179_v43 = vsub.f32 %v171_v39, %v177_v42  ;;  %204 = vst.msk [vmem:[#allocation2 + $0x8] sm:$0xff] %vm27_vm0, %v177_v42  ;;  %191 = vperm.xlu1 %637, %v177_v42  }
 0x1b1   :  { %v182_v60 = vmul.f32 1.442695, %v179_v43 }
 0x1b2   :  { %v374_v26 = vld [vmem:[#allocation2] sm:$0xff] }
 0x1b3   :  { %160 = vperm.xlu1 %637, %v155_v44  }
 0x1b4   :  { %v158_v54 = vpop.permute.xlu0 %157 }
 0x1b5   :  { %vm166_vm2 = vcmp.eq.s32.totalorder %v158_v54, %v405_v55 }
 0x1b6   :  { %vm168_vm3 = vmand %vm166_vm2, %vm152_vm1  ;;  %v375_v24 = vld [vmem:[#allocation2 + $0x8] sm:$0xff] }
 0x22a   :  { %v187_v45 = vpop.permute.xlu1 %186 }
 0x22b   :  { %v194_v46 = vsub.f32 %v753_v30, %v187_v45 }
 0x22d   :  { %v196_v47 = vmul.f32 1.442695, %v194_v46 }
 0x22e   :  { %v192_v48 = vpop.permute.xlu1 %191 }
 0x22f   :  { %639 = vpow2.f32 %v196_v47  ;;  %v195_v49 = vsub.f32 %v756_v31, %v192_v48 }
 0x231   :  { %v198_v50 = vmul.f32 1.442695, %v195_v49 }
 0x232   :  { %v161_v59 = vpop.permute.xlu1 %160 }
 0x233   :  { %641 = vpow2.f32 %v198_v50  ;;  %vm167_vm5 = vcmp.eq.s32.totalorder %v161_v59, %v405_v55 }
 0x234   :  { %vm169_vm6 = vmand %vm167_vm5, %vm153_vm4  ;;  %643 = vpow2.f32 %v182_v60 }
 0x235   :  { %645 = vpow2.f32 %v180_v61 }
 0x239   :  { %v640_v56 = vpop.eup %639 }
 0x23a   :  { %531 = vmatprep.mubr.msk.f32.mxu1 %vm152_vm1, %v640_v56 }
 0x23d   :  { %v642_v58 = vpop.eup %641 }
 0x23e   :  { %532 = vmatmul.mubr.msk.f32.vlgmr.msra.gmra.mrb[0].mxu1 %vm153_vm4, %v642_v58  ;;  %v644_v62 = vpop.eup %643 }
 0x23f   :  { %618 = vmatpush3.bf16.msra.mxu1 %v658_v35  ;;  %566 = vmatprep.mubr.msk.f32.mxu1 %vm168_vm3, %v753_v30  ;;  %v646_v0 = vpop.eup %645  ;;  %v208_v2 = vmul.f32 %v644_v62, %v206_v63 }
 0x240   :  { %619 = vmatprep.subr.bf16.mxu1 %v658_v35  ;;  %v207_v4 = vmul.f32 %v646_v0, %v205_v1 }
 0x243   :  { %620 = vmatpush3.bf16.msra.mxu1 %v658_v35 }
 0x244   :  { %621 = vmatprep.subr.bf16.mxu1 %v658_v35 }
 0x247   :  { %622 = vmatpush3.bf16.msra.mxu1 %v658_v35 }
 0x248   :  { %623 = vmatprep.subr.bf16.mxu1 %v658_v35 }
 0x24b   :  { %624 = vmatpush3.bf16.msra.mxu1 %v658_v35 }
 0x24c   :  { %625 = vmatprep.subr.bf16.mxu1 %v658_v35 }
 0x24f   :  { %626 = vmatpush3.bf16.msra.mxu1 %v658_v35 }
 0x250   :  { %627 = vmatprep.subr.bf16.mxu1 %v658_v35 }
 0x253   :  { %628 = vmatpush3.bf16.msra.mxu1 %v658_v35 }
 0x254   :  { %629 = vmatprep.subr.bf16.mxu1 %v658_v35 }
 0x257   :  { %630 = vmatpush3.bf16.msra.mxu1 %v658_v35 }
 0x258   :  { %631 = vmatprep.subr.bf16.mxu1 %v658_v35 }
 0x25b   :  { %632 = vmatpush3.bf16.msra.mxu1 %v658_v35 }
 0x25e   :  { %567 = vmatmul.mubr.msk.f32.vlgmr.msra.gmra.mrb[2].mxu1 %vm169_vm6, %v756_v31 }
 0x311   :  { %v533_v3 = vpop.f32.mrb[0].mxu1 }
 0x312   :  { %v285_v5 = vadd.f32 %v533_v3, %v208_v2  ;;  %v275_v6 = vpop.f32.mrb[1].mxu1 }
 0x313   :  { %v284_v7 = vadd.f32 %v275_v6, %v207_v4 }
 0x314   :  { %287 = vst.msk [vmem:[#allocation3 + $0x8] sm:$0xff] %vm27_vm0, %v285_v5 }
 0x315   :  { %286 = vst.msk [vmem:[#allocation3] sm:$0xff] %vm27_vm0, %v284_v7 }
 0x31b   :  { %v377_v8 = vld [vmem:[#allocation3 + $0x8] sm:$0xff] }
 0x31c   :  { %v376_v9 = vld [vmem:[#allocation3] sm:$0xff]  ;;  %647 = vlog2.f32 %v377_v8 }
 0x31d   :  { %649 = vlog2.f32 %v376_v9 }
 0x31e   :  { %651 = vrcp.f32 %v387_v10 }
 0x31f   :  { %653 = vrcp.f32 %v386_v11 }
 0x326   :  { %v648_v18 = vpop.eup %647 }
 0x327   :  { %v650_v19 = vpop.eup %649  ;;  %v381_v20 = vmul.f32 0.6931472, %v648_v18 }
 0x328   :  { %v652_v21 = vpop.eup %651  ;;  %v379_v22 = vmul.f32 0.6931472, %v650_v19 }
 0x329   :  { %v654_v23 = vpop.eup %653  ;;  %v383_v27 = vadd.f32 %v381_v20, %v375_v24 }
 0x32a   :  { %v382_v30 = vadd.f32 %v379_v22, %v374_v26 }
 0x331   :  { %v568_v14 = vpop.f32.mrb[2].mxu1 }
 0x332   :  { %v368_v15 = vadd.f32 %v568_v14, %v289_v12  ;;  %v358_v16 = vpop.f32.mrb[3].mxu1 }
 0x333   :  { %v367_v17 = vadd.f32 %v358_v16, %v288_v13 }
 0x334   :  { %370 = vst.msk [vmem:[#allocation4 + $0x8] sm:$0xff] %vm27_vm0, %v368_v15 }
 0x335   :  { %369 = vst.msk [vmem:[#allocation4] sm:$0xff] %vm27_vm0, %v367_v17 }
 0x33b   :  { %v385_v25 = vld [vmem:[#allocation4 + $0x8] sm:$0xff] }
 0x33c   :  { %v391_v28 = vmul.f32 %v652_v21, %v385_v25  ;;  %v384_v29 = vld [vmem:[#allocation4] sm:$0xff] }
 0x33d   :  { %v389_v31 = vmul.f32 %v654_v23, %v384_v29 }
 0x33e   :  { %v393_v32 = vsub.f32 %v391_v28, %v383_v27 }
 0x33f   :  { %v392_v33 = vsub.f32 %v389_v31, %v382_v30 }
 0x340   :  { %v395_v34 = vmul.f32 -1.0, %v393_v32 }
 0x341   :  { %v394_v35 = vmul.f32 -1.0, %v392_v33 }
 0x342   :  { %397 = vst.msk [vmem:[%s836_s6 + $0x8] sm:$0xff] %vm27_vm0, %v395_v34 }
 0x343   :  { %396 = vst.msk [vmem:[%s836_s6] sm:$0xff] %vm27_vm0, %v394_v35 }

</bundles_post_ra>
